<compile_context>
chip_gen: v7x
topology: tpu7x:2x2x1
jax: 0.10.0
libtpu: 0.0.40
codegen_flags: <defaults>
</compile_context>

<pallas_src>
import functools

import jax
import jax.numpy as jnp
from jax import lax
from jax.experimental import pallas as pl
from jax.experimental.pallas import tpu as pltpu


def _layernorm_kernel(x_ref, g_ref, o_ref, *, eps, inv_d):
    # x_ref: (rows_per_block, D_pad); g_ref: (1, D_pad); o_ref: (rows_per_block, D_pad)
    x = x_ref[...].astype(jnp.float32)
    # Single pass over the tile: sum and sum-of-squares together (f32 accumulation).
    s = jnp.sum(x, axis=-1, keepdims=True)
    sq = jnp.sum(x * x, axis=-1, keepdims=True)
    mean = s * inv_d
    # unbiased=False variance; clamp guards E[x^2]-mean^2 cancellation.
    var = jnp.maximum(sq * inv_d - mean * mean, 0.0)
    g = g_ref[...].astype(jnp.float32)              # (1, D_pad) broadcasts over rows
    o_ref[...] = ((x - mean) * lax.rsqrt(var + eps) * g).astype(o_ref.dtype)


def _round_up(n, m):
    return ((n + m - 1) // m) * m


def _vmem_capacity_bytes():
    try:
        return int(pltpu.get_tpu_info().vmem_capacity_bytes)
    except Exception:
        return 64 * 1024 * 1024  # conservative (v7x-sized) fallback


def _pick_rows_per_block(n_rows, d, dtype):
    """Largest sublane-aligned row tile that fits the pipeline in VMEM."""
    itemsize = jnp.dtype(dtype).itemsize
    pack = max(8, 32 // itemsize)          # sublane packing: 8 f32, 16 bf16, 32 i8
    budget = _vmem_capacity_bytes() // 2   # headroom for compiler scratch / temporaries
    # Only the double-buffered input + output tiles count against the pipeline
    # footprint; Mosaic's in-kernel temporaries are not replicated per buffer.
    bytes_per_row = 4 * d * itemsize
    rows = budget // max(bytes_per_row, 1)
    # 512-row tiles sit at ~85% of the HBM roofline; 1024 buys ~1% for 2x VMEM.
    rows = min(rows, 512)
    # Keep >= ~8 grid steps when there is enough work (>= 4 per TC on v7x keeps
    # prologue/epilogue DMAs hidden), but never shrink a tile below 256 rows.
    if n_rows >= 8 * 256:
        rows = min(rows, max(_round_up(pl.cdiv(n_rows, 8), pack), 256))
    rows = min(rows, _round_up(n_rows, pack))
    rows = max(pack, (rows // pack) * pack)
    return int(rows)


def layer_norm(x, g, *, rows_per_block=None, core_parallel=False):
    """(x - mean) * rsqrt(var + eps) * g over the last axis.

    x: (..., D), g: (D,).  eps matches the PyTorch module: 1e-5 for f32 else 1e-3.
    Set core_parallel=True on v7x to shard the row grid across both TensorCores.
    """
    orig_shape = x.shape
    D = orig_shape[-1]
    assert g.shape == (D,)

    eps = 1e-5 if x.dtype == jnp.float32 else 1e-3

    # Flatten all leading dims into rows; normalize each row independently.
    x2 = x.reshape(-1, D)
    n_rows = x2.shape[0]

    # Guarantee a lane-dense output: pad D to a multiple of 128 when needed.
    # Padded lanes are zero, contribute nothing to sum / sum-of-squares (we
    # divide by the true D in-kernel), and are sliced off afterwards.
    d_pad = _round_up(D, 128)
    if d_pad != D:
        x2 = jnp.pad(x2, ((0, 0), (0, d_pad - D)))
        g2 = jnp.pad(g, (0, d_pad - D)).reshape(1, d_pad)
    else:
        g2 = g.reshape(1, d_pad)

    if rows_per_block is None:
        rows_per_block = _pick_rows_per_block(n_rows, d_pad, x.dtype)

    grid = (pl.cdiv(n_rows, rows_per_block),)  # ragged last block is masked by Pallas

    itemsize = jnp.dtype(x.dtype).itemsize
    cost = pl.CostEstimate(
        flops=7 * n_rows * D,
        transcendentals=n_rows,
        bytes_accessed=2 * n_rows * D * itemsize + D * jnp.dtype(g.dtype).itemsize,
    )

    # VMEM limit derived from actual usage: double-buffered in + out tiles,
    # one f32 working tile, gamma, plus a small margin.
    capacity = _vmem_capacity_bytes()
    tile_bytes = rows_per_block * d_pad * itemsize
    need = 2 * tile_bytes            # double-buffered input
    need += 2 * tile_bytes           # double-buffered output
    need += rows_per_block * d_pad * 4  # f32 working tile inside the body
    need += 2 * d_pad * jnp.dtype(g.dtype).itemsize
    vmem_limit = need + (4 << 20)
    vmem_limit = int(min(max(vmem_limit, 16 << 20), capacity - (8 << 20)))

    # Plain "parallel" barely changes codegen; CORE_PARALLEL is the explicit
    # megacore knob for v7x (2 TCs). Default off so single-TC chips are unaffected.
    semantics = (pltpu.CORE_PARALLEL,) if core_parallel else ("parallel",)

    out = pl.pallas_call(
        functools.partial(_layernorm_kernel, eps=eps, inv_d=1.0 / D),
        out_shape=jax.ShapeDtypeStruct((n_rows, d_pad), x.dtype),
        grid_spec=pltpu.PrefetchScalarGridSpec(
            num_scalar_prefetch=0,
            grid=grid,
            in_specs=[
                pl.BlockSpec((rows_per_block, d_pad), lambda i: (i, 0)),
                pl.BlockSpec((1, d_pad), lambda i: (0, 0)),
            ],
            out_specs=pl.BlockSpec((rows_per_block, d_pad), lambda i: (i, 0)),
        ),
        compiler_params=pltpu.CompilerParams(
            dimension_semantics=semantics,
            vmem_limit_bytes=vmem_limit,
        ),
        cost_estimate=cost,
    )(x2, g2)

    if d_pad != D:
        out = out[:, :D]
    return out.reshape(orig_shape)


def _reference(x, g):
    eps = 1e-5 if x.dtype == jnp.float32 else 1e-3
    xf = x.astype(jnp.float32)
    mean = jnp.mean(xf, axis=-1, keepdims=True)
    var = jnp.mean((xf - mean) ** 2, axis=-1, keepdims=True)
    return ((xf - mean) * lax.rsqrt(var + eps) * g.astype(jnp.float32)).astype(x.dtype)


if __name__ == "__main__":
    key = jax.random.PRNGKey(0)
    B, S, D = 2, 8, 32

    x = jax.random.normal(key, (B, S, D), dtype=jnp.float32)
    # nn.Parameter(torch.ones(dim)) -> deterministic ones init
    g = jnp.ones((D,), dtype=jnp.float32)

    y = jax.block_until_ready(layer_norm(x, g))
    y_ref = _reference(x, g)
    assert y.shape == x.shape
    assert jnp.allclose(y, y_ref, atol=1e-5, rtol=1e-5)

    # Ragged row count (exercises the masked last row-block; lanes stay dense).
    x2 = jax.random.normal(jax.random.PRNGKey(1), (3, 5, D), dtype=jnp.float32)
    y2 = jax.block_until_ready(layer_norm(x2, g))
    assert jnp.allclose(y2, _reference(x2, g), atol=1e-5, rtol=1e-5)

    # Lane-aligned D (no padding path), larger rows.
    x3 = jax.random.normal(jax.random.PRNGKey(2), (4, 64, 256), dtype=jnp.float32)
    g3 = jnp.ones((256,), dtype=jnp.float32)
    y3 = jax.block_until_ready(layer_norm(x3, g3))
    assert jnp.allclose(y3, _reference(x3, g3), atol=1e-5, rtol=1e-5)

    # bf16 path (eps = 1e-3 branch, 16-row sublane pack).
    xb = x.astype(jnp.bfloat16)
    gb = g.astype(jnp.bfloat16)
    yb = jax.block_until_ready(layer_norm(xb, gb))
    assert jnp.allclose(
        yb.astype(jnp.float32),
        _reference(xb, gb).astype(jnp.float32),
        atol=2e-2,
        rtol=2e-2,
    )

    print("KERNEL_OK")
</pallas_src>

<mosaic_0001>
module attributes {stable_mosaic.version = 11 : i64} {
  func.func @_layernorm_kernel(%arg0: i32, %arg1: memref<16x128xf32, #tpu.memory_space<vmem>>, %arg2: memref<1x128xf32, #tpu.memory_space<vmem>>, %arg3: memref<16x128xf32, #tpu.memory_space<vmem>>) attributes {dimension_semantics = [#tpu.dimension_semantics<parallel>], iteration_bounds = array<i64: 1>, scalar_prefetch = 0 : i64, scratch_operands = 0 : i64, tpu.core_type = #tpu.core_type<tc>, window_params = [{transform_indices = @transform_0, window_bounds = array<i64: 16, 128>}, {pipeline_mode = #tpu.pipeline_mode<synchronous>, transform_indices = @transform_1, window_bounds = array<i64: 1, 128>}, {transform_indices = @transform_2, window_bounds = array<i64: 16, 128>}]} {
    %c0 = arith.constant 0 : index
    %c0_0 = arith.constant 0 : index
    %0 = vector.load %arg1[%c0, %c0_0] : memref<16x128xf32, #tpu.memory_space<vmem>>, vector<16x128xf32>
    %cst = arith.constant dense<0.000000e+00> : vector<16xf32>
    %1 = vector.multi_reduction <add>, %0, %cst [1] : vector<16x128xf32> to vector<16xf32>
    %2 = vector.shape_cast %1 : vector<16xf32> to vector<16x1xf32>
    %3 = arith.mulf %0, %0 : vector<16x128xf32>
    %cst_1 = arith.constant dense<0.000000e+00> : vector<16xf32>
    %4 = vector.multi_reduction <add>, %3, %cst_1 [1] : vector<16x128xf32> to vector<16xf32>
    %5 = vector.shape_cast %4 : vector<16xf32> to vector<16x1xf32>
    %cst_2 = arith.constant 3.125000e-02 : f32
    %6 = vector.broadcast %cst_2 : f32 to vector<16x1xf32>
    %7 = arith.mulf %2, %6 : vector<16x1xf32>
    %cst_3 = arith.constant 3.125000e-02 : f32
    %8 = vector.broadcast %cst_3 : f32 to vector<16x1xf32>
    %9 = arith.mulf %5, %8 : vector<16x1xf32>
    %10 = arith.mulf %7, %7 : vector<16x1xf32>
    %11 = arith.subf %9, %10 : vector<16x1xf32>
    %cst_4 = arith.constant 0.000000e+00 : f32
    %12 = vector.broadcast %cst_4 : f32 to vector<16x1xf32>
    %13 = arith.maximumf %11, %12 : vector<16x1xf32>
    %c0_5 = arith.constant 0 : index
    %c0_6 = arith.constant 0 : index
    %14 = vector.load %arg2[%c0_5, %c0_6] : memref<1x128xf32, #tpu.memory_space<vmem>>, vector<1x128xf32>
    %15 = vector.broadcast %7 : vector<16x1xf32> to vector<16x128xf32>
    %16 = arith.subf %0, %15 : vector<16x128xf32>
    %cst_7 = arith.constant 9.99999974E-6 : f32
    %17 = vector.broadcast %cst_7 : f32 to vector<16x1xf32>
    %18 = arith.addf %13, %17 : vector<16x1xf32>
    %19 = math.rsqrt %18 : vector<16x1xf32>
    %20 = vector.broadcast %19 : vector<16x1xf32> to vector<16x128xf32>
    %21 = arith.mulf %16, %20 : vector<16x128xf32>
    %22 = vector.broadcast %14 : vector<1x128xf32> to vector<16x128xf32>
    %23 = arith.mulf %21, %22 : vector<16x128xf32>
    %c0_8 = arith.constant 0 : index
    %c0_9 = arith.constant 0 : index
    %24 = vector.load %arg3[%c0_8, %c0_9] : memref<16x128xf32, #tpu.memory_space<vmem>>, vector<16x128xf32>
    tpu.vector_store %arg3[%c0_8, %c0_9], %23 {strides = array<i32>} : memref<16x128xf32, #tpu.memory_space<vmem>>, vector<16x128xf32>,
    return
  }
  func.func @transform_0(%arg0: i32) -> (i32, i32) {
    %c0_i32 = arith.constant 0 : i32
    %c0_i32_0 = arith.constant 0 : i32
    return %arg0, %c0_i32 : i32, i32
  }
  func.func @transform_1(%arg0: i32) -> (i32, i32) {
    %c0_i32 = arith.constant 0 : i32
    %c0_i32_0 = arith.constant 0 : i32
    %c0_i32_1 = arith.constant 0 : i32
    return %c0_i32, %c0_i32_0 : i32, i32
  }
  func.func @transform_2(%arg0: i32) -> (i32, i32) {
    %c0_i32 = arith.constant 0 : i32
    %c0_i32_0 = arith.constant 0 : i32
    return %arg0, %c0_i32 : i32, i32
  }
}

</mosaic_0001>

<bundles_post_ra>
// kernel: tpu_custom_call.1
= control target key start
LH: loop header
LB: loop body
LE: loop exit
PB: predicated region body
PF: predicated region fallthrough
CT: control target
= control target key end

     0   :  { %7 = vsyncpa [#allocation3], 0  ;;  %s193_s0 = inlined_call_operand.hbm [shape: f32[16,128], index: 0, kind: input, shape index: {}]   ;;  %s194_s1 = inlined_call_operand.vmem [shape: f32[1,128], index: 1, kind: input, shape index: {}]   ;;  %s195_s2 = inlined_call_operand.hbm [shape: f32[16,128], index: 2, kind: output, shape index: {}]  }
   0x1   :  { %8 = vsyncpa [#allocation4], 0  ;;  %s141_s9 = smov [#allocation2]   ;;  %s93_s13 = scalar_lea.hbm %s193_s0, 256 }
   0x2   :  { %s14_s10 = sshll.u32 %s141_s9, 4  ;;  %p94_p0 = scmp.ne.s32.totalorder %s193_s0, %s93_s13  ;;  %s15_s10 = int_to_ptr.vmem [resolvable:$true] %s14_s10 }
   0x3   :  { %p97_p1 = scmp.lt.u32.totalorder %s93_s13, %s193_s0 }
   0x5   :  { %p99_p2 = pnand %p97_p1, %p94_p0 }
   0x7   :  { %102 = shalt.err (!%p99_p2)
}
   0x8   :  { %s103_s18 = scalar_lea.vmem %s15_s10, 256  ;;  %p108_p4 = scmp.lt.s32.totalorder %s15_s10, %s15_s10 }
   0x9   :  { %p104_p3 = scmp.ne.s32.totalorder %s15_s10, %s103_s18  ;;  %p109_p5 = scmp.lt.s32.totalorder %s103_s18, %s103_s18 }
   0xb   :  { %p110_p6 = por %p109_p5, %p108_p4 }
   0xd   :  { %p111_p7 = pnand %p110_p6, %p104_p3 }
   0xf   :  { %114 = shalt.err (!%p111_p7)
}
  0x10   :  { %s142_s19 = smov 128   ;;  %s143_s20 = smov 8  }
  0x11   :  { %20 = dma.hbm_to_vmem [thread:$0]  %s193_s0, 256, %s15_s10, [#allocation3], %s142_s19, %s142_s19, %s143_s20  }
  0x12   :  { %137 = dma.done.wait [#allocation3], 256  }
  0x13   :  { %138 = vsyncadd [#allocation3], 4294967040  ;;  %v26_v0 = vld [vmem:[#allocation2] sm:$0xff]  ;;  %v27_v1 = vld [vmem:[#allocation2 + $0x8] sm:$0xff]  ;;  %s144_s24 = smov [#allocation5]  }
  0x14   :  { %28 = vadd.xlane.f32.xlu0 %v26_v0  ;;  %v32_v2 = vmul.f32 %v26_v0, %v26_v0  ;;  %v33_v3 = vmul.f32 %v27_v1, %v27_v1  ;;  %v84_v22 = vld [vmem:[%s194_s1] ss:$0 sm:$0xff]  ;;  %s72_s25 = sshll.u32 %s144_s24, 4  ;;  %s73_s25 = int_to_ptr.vmem [resolvable:$true] %s72_s25 }
  0x15   :  { %s115_s26 = scalar_lea.vmem %s73_s25, 256  ;;  %p120_p9 = scmp.lt.s32.totalorder %s73_s25, %s73_s25 }
  0x16   :  { %34 = vadd.xlane.f32.xlu1 %v32_v2  ;;  %p116_p8 = scmp.ne.s32.totalorder %s73_s25, %s115_s26  ;;  %p121_p10 = scmp.lt.s32.totalorder %s115_s26, %s115_s26 }
  0x18   :  { %30 = vadd.xlane.f32.xlu0 %v27_v1  ;;  %p122_p11 = por %p121_p10, %p120_p9 }
  0x1a   :  { %36 = vadd.xlane.f32.xlu1 %v33_v3  ;;  %p123_p12 = pnand %p122_p11, %p116_p8 }
  0xa1   :  { %v29_v4 = vpop.xlane.xlu0 %28 }
  0xa2   :  { %v38_v5 = vmul.f32 0.03125, %v29_v4 }
  0xa3   :  { %v35_v6 = vpop.xlane.xlu1 %34 }
  0xa4   :  { %v42_v7 = vmul.f32 %v38_v5, %v38_v5  ;;  %v40_v8 = vmul.f32 0.03125, %v35_v6  ;;  %v49_v20 = vsub.f32 %v26_v0, %v38_v5 }
  0xa5   :  { %v31_v9 = vpop.xlane.xlu0 %30 }
  0xa6   :  { %v44_v10 = vsub.f32 %v40_v8, %v42_v7  ;;  %v39_v11 = vmul.f32 0.03125, %v31_v9 }
  0xa7   :  { %v37_v12 = vpop.xlane.xlu1 %36 }
  0xa8   :  { %v46_v13 = vmax.f32 %v44_v10, 0.0  ;;  %v43_v14 = vmul.f32 %v39_v11, %v39_v11  ;;  %v41_v15 = vmul.f32 0.03125, %v37_v12  ;;  %v50_v24 = vsub.f32 %v27_v1, %v39_v11 }
  0xaa   :  { %v51_v16 = vadd.f32 1e-05, %v46_v13  ;;  %v45_v17 = vsub.f32 %v41_v15, %v43_v14 }
  0xac   :  { %89 = vrsqrt.f32 %v51_v16  ;;  %v47_v18 = vmax.f32 %v45_v17, 0.0 }
  0xae   :  { %v52_v19 = vadd.f32 1e-05, %v47_v18 }
  0xb0   :  { %91 = vrsqrt.f32 %v52_v19 }
  0xb6   :  { %v90_v21 = vpop.eup %89 }
  0xb7   :  { %v55_v23 = vmul.f32 %v90_v21, %v49_v20 }
  0xb9   :  { %v63_v25 = vmul.f32 %v84_v22, %v55_v23 }
  0xba   :  { %v92_v26 = vpop.eup %91 }
  0xbb   :  { %v56_v27 = vmul.f32 %v92_v26, %v50_v24  ;;  %65 = vst [vmem:[#allocation5] sm:$0xff] %v63_v25 }
  0xbd   :  { %v64_v28 = vmul.f32 %v84_v22, %v56_v27 }
  0xbf   :  { %66 = vst [vmem:[#allocation5 + $0x8] sm:$0xff] %v64_v28 }
  0xc0   :  { %126 = shalt.err (!%p123_p12)
}
  0xc1   :  { %s127_s28 = scalar_lea.hbm %s195_s2, 256 }
  0xc2   :  { %p128_p13 = scmp.ne.s32.totalorder %s195_s2, %s127_s28  ;;  %p131_p0 = scmp.lt.u32.totalorder %s127_s28, %s195_s2 }
  0xc4   :  { %p133_p1 = pnand %p131_p0, %p128_p13 }
  0xc6   :  { %136 = shalt.err (!%p133_p1)
}
  0xc7   :  { %78 = dma.vmem_to_hbm [thread:$0]  %s73_s25, 256, %s195_s2, [#allocation4], %s142_s19, %s142_s19, %s143_s20  }
  0xc8   :  { %139 = dma.done.wait [#allocation4], 256  }
  0xc9   :  { %140 = vsyncadd [#allocation4], 4294967040 }
  0xca   :  { %82 = vsyncpa [#allocation3], 1 }
  0xcb   :  { %83 = vsyncpa [#allocation4], 1 }

</bundles_post_ra>
